<compile_context>
chip_gen: v6e
topology: v6e:2x2x1
jax: 0.10.0
libtpu: 0.0.40
codegen_flags: <defaults>
</compile_context>

<pallas_src>
import math
import functools

import jax
import jax.numpy as jnp
from jax.experimental import pallas as pl
from jax.experimental.pallas import tpu as pltpu

B = 2          # batch
S = 8          # sequence length
D_MODEL = 128  # d_model (lane-dense: multiple of 128)
VOCAB = 256    # vocab size
TOK_TILE = 8   # tokens per grid step (sublane-aligned output blocks)


def embed_gather_kernel(ids_ref, table_hbm, out_ref, row_buf, copy_sems, *,
                        tok_tile, scale):
    """Gather `tok_tile` embedding rows from HBM and scale by sqrt(d_model).

    ids_ref   : SMEM (N_pad,) int32  -- scalar-prefetched token ids
    table_hbm : HBM  (V, D)          -- raw ref, manual DMA only
    out_ref   : VMEM (tok_tile, D)   -- output tile for this grid step
    row_buf   : VMEM (tok_tile, D)   -- gather landing buffer
    copy_sems : DMA semaphores (tok_tile,)
    """
    base = pl.program_id(0) * tok_tile

    # Issue all per-row DMAs for this tile up-front (they overlap each other),
    # then wait; each copies exactly one (D,) embedding row HBM -> VMEM.
    copies = []
    for r in range(tok_tile):
        tok = ids_ref[base + r]
        cp = pltpu.make_async_copy(table_hbm.at[tok], row_buf.at[r],
                                   copy_sems.at[r])
        cp.start()
        copies.append(cp)
    for cp in copies:
        cp.wait()

    out_ref[...] = (row_buf[...] * scale).astype(out_ref.dtype)


def input_embedding(token_ids, emb_table, *, tok_tile=TOK_TILE):
    """token_ids: (B, S) int32, emb_table: (V, D) f32 -> (B, S, D) f32."""
    b, s = token_ids.shape
    v, d = emb_table.shape
    n = b * s
    ids_flat = token_ids.reshape(n).astype(jnp.int32)

    # Pad the token axis to a multiple of the tile (pad tokens gather row 0
    # and are sliced off afterwards).
    n_tiles = (n + tok_tile - 1) // tok_tile
    n_pad = n_tiles * tok_tile
    if n_pad != n:
        ids_flat = jnp.concatenate(
            [ids_flat, jnp.zeros((n_pad - n,), jnp.int32)])

    scale = math.sqrt(d)
    kernel = functools.partial(embed_gather_kernel, tok_tile=tok_tile,
                               scale=scale)

    out = pl.pallas_call(
        kernel,
        out_shape=jax.ShapeDtypeStruct((n_pad, d), emb_table.dtype),
        grid_spec=pltpu.PrefetchScalarGridSpec(
            num_scalar_prefetch=1,                 # token ids -> SMEM
            grid=(n_tiles,),
            in_specs=[pl.BlockSpec(memory_space=pl.ANY)],  # table stays in HBM
            out_specs=pl.BlockSpec((tok_tile, d), lambda t, ids: (t, 0)),
            scratch_shapes=[
                pltpu.VMEM((tok_tile, d), emb_table.dtype),
                pltpu.SemaphoreType.DMA((tok_tile,)),
            ]),
        compiler_params=pltpu.CompilerParams(
            dimension_semantics=("parallel",)),
    )(ids_flat, emb_table)

    return out[:n].reshape(b, s, d)


if __name__ == "__main__":
    key = jax.random.PRNGKey(0)
    k_ids, k_tab = jax.random.split(key)

    token_ids = jax.random.randint(k_ids, (B, S), 0, VOCAB, dtype=jnp.int32)
    emb_table = jax.random.normal(k_tab, (VOCAB, D_MODEL), dtype=jnp.float32)

    out = input_embedding(token_ids, emb_table)
    out = jax.block_until_ready(out)

    # Pure-JAX reference of the PyTorch forward: embedding(x) * sqrt(d_model)
    ref = emb_table[token_ids] * math.sqrt(D_MODEL)

    assert out.shape == (B, S, D_MODEL)
    assert jnp.allclose(out, ref, rtol=1e-6, atol=1e-6), (
        float(jnp.max(jnp.abs(out - ref))))

    print("KERNEL_OK")
</pallas_src>

<mosaic_0001>
module attributes {stable_mosaic.version = 11 : i64} {
  func.func @embed_gather_kernel(%arg0: i32, %arg1: memref<16xi32, #tpu.memory_space<smem>>, %arg2: memref<256x128xf32, #tpu.memory_space<any>>, %arg3: memref<8x128xf32, #tpu.memory_space<vmem>>, %arg4: memref<8x128xf32, #tpu.memory_space<vmem>>, %arg5: memref<8x!tpu.dma_semaphore, #tpu.memory_space<semaphore_mem>>) attributes {dimension_semantics = [#tpu.dimension_semantics<parallel>], iteration_bounds = array<i64: 2>, scalar_prefetch = 1 : i64, scratch_operands = 2 : i64, tpu.core_type = #tpu.core_type<tc>, window_params = [{}, {transform_indices = @transform_1, window_bounds = array<i64: 8, 128>}]} {
    %c8_i32 = arith.constant 8 : i32
    %0 = arith.muli %arg0, %c8_i32 : i32
    %c0_i32 = arith.constant 0 : i32
    %1 = arith.addi %0, %c0_i32 : i32
    %2 = arith.index_cast %1 : i32 to index
    %3 = memref.load %arg1[%2] : memref<16xi32, #tpu.memory_space<smem>>
    %c0_i32_0 = arith.constant 0 : i32
    %c0_i32_1 = arith.constant 0 : i32
    %c0_i32_2 = arith.constant 0 : i32
    %4 = tpu.memref_slice %arg2[%3, %c0_i32_2] : memref<256x128xf32, #tpu.memory_space<any>> -> memref<1x128xf32, #tpu.memory_space<any>>
    %5 = tpu.memref_squeeze %4 : memref<1x128xf32, #tpu.memory_space<any>> -> memref<128xf32, #tpu.memory_space<any>>
    %c0_i32_3 = arith.constant 0 : i32
    %6 = tpu.memref_slice %arg4[%c0_i32_0, %c0_i32_3] : memref<8x128xf32, #tpu.memory_space<vmem>> -> memref<1x128xf32, #tpu.memory_space<vmem>>
    %7 = tpu.memref_squeeze %6 : memref<1x128xf32, #tpu.memory_space<vmem>> -> memref<128xf32, #tpu.memory_space<vmem>>
    %8 = tpu.memref_slice %arg5[%c0_i32_1] : memref<8x!tpu.dma_semaphore, #tpu.memory_space<semaphore_mem>> -> memref<1x!tpu.dma_semaphore, #tpu.memory_space<semaphore_mem>>
    %9 = tpu.memref_squeeze %8 : memref<1x!tpu.dma_semaphore, #tpu.memory_space<semaphore_mem>> -> memref<!tpu.dma_semaphore, #tpu.memory_space<semaphore_mem>>
    tpu.enqueue_dma source(%5 : memref<128xf32, #tpu.memory_space<any>>) target(%7 : memref<128xf32, #tpu.memory_space<vmem>>) target_semaphore(%9 : memref<!tpu.dma_semaphore, #tpu.memory_space<semaphore_mem>>)
    %c1_i32 = arith.constant 1 : i32
    %10 = arith.addi %0, %c1_i32 : i32
    %11 = arith.index_cast %10 : i32 to index
    %12 = memref.load %arg1[%11] : memref<16xi32, #tpu.memory_space<smem>>
    %c1_i32_4 = arith.constant 1 : i32
    %c1_i32_5 = arith.constant 1 : i32
    %c0_i32_6 = arith.constant 0 : i32
    %13 = tpu.memref_slice %arg2[%12, %c0_i32_6] : memref<256x128xf32, #tpu.memory_space<any>> -> memref<1x128xf32, #tpu.memory_space<any>>
    %14 = tpu.memref_squeeze %13 : memref<1x128xf32, #tpu.memory_space<any>> -> memref<128xf32, #tpu.memory_space<any>>
    %c0_i32_7 = arith.constant 0 : i32
    %15 = tpu.memref_slice %arg4[%c1_i32_4, %c0_i32_7] : memref<8x128xf32, #tpu.memory_space<vmem>> -> memref<1x128xf32, #tpu.memory_space<vmem>>
    %16 = tpu.memref_squeeze %15 : memref<1x128xf32, #tpu.memory_space<vmem>> -> memref<128xf32, #tpu.memory_space<vmem>>
    %17 = tpu.memref_slice %arg5[%c1_i32_5] : memref<8x!tpu.dma_semaphore, #tpu.memory_space<semaphore_mem>> -> memref<1x!tpu.dma_semaphore, #tpu.memory_space<semaphore_mem>>
    %18 = tpu.memref_squeeze %17 : memref<1x!tpu.dma_semaphore, #tpu.memory_space<semaphore_mem>> -> memref<!tpu.dma_semaphore, #tpu.memory_space<semaphore_mem>>
    tpu.enqueue_dma source(%14 : memref<128xf32, #tpu.memory_space<any>>) target(%16 : memref<128xf32, #tpu.memory_space<vmem>>) target_semaphore(%18 : memref<!tpu.dma_semaphore, #tpu.memory_space<semaphore_mem>>)
    %c2_i32 = arith.constant 2 : i32
    %19 = arith.addi %0, %c2_i32 : i32
    %20 = arith.index_cast %19 : i32 to index
    %21 = memref.load %arg1[%20] : memref<16xi32, #tpu.memory_space<smem>>
    %c2_i32_8 = arith.constant 2 : i32
    %c2_i32_9 = arith.constant 2 : i32
    %c0_i32_10 = arith.constant 0 : i32
    %22 = tpu.memref_slice %arg2[%21, %c0_i32_10] : memref<256x128xf32, #tpu.memory_space<any>> -> memref<1x128xf32, #tpu.memory_space<any>>
    %23 = tpu.memref_squeeze %22 : memref<1x128xf32, #tpu.memory_space<any>> -> memref<128xf32, #tpu.memory_space<any>>
    %c0_i32_11 = arith.constant 0 : i32
    %24 = tpu.memref_slice %arg4[%c2_i32_8, %c0_i32_11] : memref<8x128xf32, #tpu.memory_space<vmem>> -> memref<1x128xf32, #tpu.memory_space<vmem>>
    %25 = tpu.memref_squeeze %24 : memref<1x128xf32, #tpu.memory_space<vmem>> -> memref<128xf32, #tpu.memory_space<vmem>>
    %26 = tpu.memref_slice %arg5[%c2_i32_9] : memref<8x!tpu.dma_semaphore, #tpu.memory_space<semaphore_mem>> -> memref<1x!tpu.dma_semaphore, #tpu.memory_space<semaphore_mem>>
    %27 = tpu.memref_squeeze %26 : memref<1x!tpu.dma_semaphore, #tpu.memory_space<semaphore_mem>> -> memref<!tpu.dma_semaphore, #tpu.memory_space<semaphore_mem>>
    tpu.enqueue_dma source(%23 : memref<128xf32, #tpu.memory_space<any>>) target(%25 : memref<128xf32, #tpu.memory_space<vmem>>) target_semaphore(%27 : memref<!tpu.dma_semaphore, #tpu.memory_space<semaphore_mem>>)
    %c3_i32 = arith.constant 3 : i32
    %28 = arith.addi %0, %c3_i32 : i32
    %29 = arith.index_cast %28 : i32 to index
    %30 = memref.load %arg1[%29] : memref<16xi32, #tpu.memory_space<smem>>
    %c3_i32_12 = arith.constant 3 : i32
    %c3_i32_13 = arith.constant 3 : i32
    %c0_i32_14 = arith.constant 0 : i32
    %31 = tpu.memref_slice %arg2[%30, %c0_i32_14] : memref<256x128xf32, #tpu.memory_space<any>> -> memref<1x128xf32, #tpu.memory_space<any>>
    %32 = tpu.memref_squeeze %31 : memref<1x128xf32, #tpu.memory_space<any>> -> memref<128xf32, #tpu.memory_space<any>>
    %c0_i32_15 = arith.constant 0 : i32
    %33 = tpu.memref_slice %arg4[%c3_i32_12, %c0_i32_15] : memref<8x128xf32, #tpu.memory_space<vmem>> -> memref<1x128xf32, #tpu.memory_space<vmem>>
    %34 = tpu.memref_squeeze %33 : memref<1x128xf32, #tpu.memory_space<vmem>> -> memref<128xf32, #tpu.memory_space<vmem>>
    %35 = tpu.memref_slice %arg5[%c3_i32_13] : memref<8x!tpu.dma_semaphore, #tpu.memory_space<semaphore_mem>> -> memref<1x!tpu.dma_semaphore, #tpu.memory_space<semaphore_mem>>
    %36 = tpu.memref_squeeze %35 : memref<1x!tpu.dma_semaphore, #tpu.memory_space<semaphore_mem>> -> memref<!tpu.dma_semaphore, #tpu.memory_space<semaphore_mem>>
    tpu.enqueue_dma source(%32 : memref<128xf32, #tpu.memory_space<any>>) target(%34 : memref<128xf32, #tpu.memory_space<vmem>>) target_semaphore(%36 : memref<!tpu.dma_semaphore, #tpu.memory_space<semaphore_mem>>)
    %c4_i32 = arith.constant 4 : i32
    %37 = arith.addi %0, %c4_i32 : i32
    %38 = arith.index_cast %37 : i32 to index
    %39 = memref.load %arg1[%38] : memref<16xi32, #tpu.memory_space<smem>>
    %c4_i32_16 = arith.constant 4 : i32
    %c4_i32_17 = arith.constant 4 : i32
    %c0_i32_18 = arith.constant 0 : i32
    %40 = tpu.memref_slice %arg2[%39, %c0_i32_18] : memref<256x128xf32, #tpu.memory_space<any>> -> memref<1x128xf32, #tpu.memory_space<any>>
    %41 = tpu.memref_squeeze %40 : memref<1x128xf32, #tpu.memory_space<any>> -> memref<128xf32, #tpu.memory_space<any>>
    %c0_i32_19 = arith.constant 0 : i32
    %42 = tpu.memref_slice %arg4[%c4_i32_16, %c0_i32_19] : memref<8x128xf32, #tpu.memory_space<vmem>> -> memref<1x128xf32, #tpu.memory_space<vmem>>
    %43 = tpu.memref_squeeze %42 : memref<1x128xf32, #tpu.memory_space<vmem>> -> memref<128xf32, #tpu.memory_space<vmem>>
    %44 = tpu.memref_slice %arg5[%c4_i32_17] : memref<8x!tpu.dma_semaphore, #tpu.memory_space<semaphore_mem>> -> memref<1x!tpu.dma_semaphore, #tpu.memory_space<semaphore_mem>>
    %45 = tpu.memref_squeeze %44 : memref<1x!tpu.dma_semaphore, #tpu.memory_space<semaphore_mem>> -> memref<!tpu.dma_semaphore, #tpu.memory_space<semaphore_mem>>
    tpu.enqueue_dma source(%41 : memref<128xf32, #tpu.memory_space<any>>) target(%43 : memref<128xf32, #tpu.memory_space<vmem>>) target_semaphore(%45 : memref<!tpu.dma_semaphore, #tpu.memory_space<semaphore_mem>>)
    %c5_i32 = arith.constant 5 : i32
    %46 = arith.addi %0, %c5_i32 : i32
    %47 = arith.index_cast %46 : i32 to index
    %48 = memref.load %arg1[%47] : memref<16xi32, #tpu.memory_space<smem>>
    %c5_i32_20 = arith.constant 5 : i32
    %c5_i32_21 = arith.constant 5 : i32
    %c0_i32_22 = arith.constant 0 : i32
    %49 = tpu.memref_slice %arg2[%48, %c0_i32_22] : memref<256x128xf32, #tpu.memory_space<any>> -> memref<1x128xf32, #tpu.memory_space<any>>
    %50 = tpu.memref_squeeze %49 : memref<1x128xf32, #tpu.memory_space<any>> -> memref<128xf32, #tpu.memory_space<any>>
    %c0_i32_23 = arith.constant 0 : i32
    %51 = tpu.memref_slice %arg4[%c5_i32_20, %c0_i32_23] : memref<8x128xf32, #tpu.memory_space<vmem>> -> memref<1x128xf32, #tpu.memory_space<vmem>>
    %52 = tpu.memref_squeeze %51 : memref<1x128xf32, #tpu.memory_space<vmem>> -> memref<128xf32, #tpu.memory_space<vmem>>
    %53 = tpu.memref_slice %arg5[%c5_i32_21] : memref<8x!tpu.dma_semaphore, #tpu.memory_space<semaphore_mem>> -> memref<1x!tpu.dma_semaphore, #tpu.memory_space<semaphore_mem>>
    %54 = tpu.memref_squeeze %53 : memref<1x!tpu.dma_semaphore, #tpu.memory_space<semaphore_mem>> -> memref<!tpu.dma_semaphore, #tpu.memory_space<semaphore_mem>>
    tpu.enqueue_dma source(%50 : memref<128xf32, #tpu.memory_space<any>>) target(%52 : memref<128xf32, #tpu.memory_space<vmem>>) target_semaphore(%54 : memref<!tpu.dma_semaphore, #tpu.memory_space<semaphore_mem>>)
    %c6_i32 = arith.constant 6 : i32
    %55 = arith.addi %0, %c6_i32 : i32
    %56 = arith.index_cast %55 : i32 to index
    %57 = memref.load %arg1[%56] : memref<16xi32, #tpu.memory_space<smem>>
    %c6_i32_24 = arith.constant 6 : i32
    %c6_i32_25 = arith.constant 6 : i32
    %c0_i32_26 = arith.constant 0 : i32
    %58 = tpu.memref_slice %arg2[%57, %c0_i32_26] : memref<256x128xf32, #tpu.memory_space<any>> -> memref<1x128xf32, #tpu.memory_space<any>>
    %59 = tpu.memref_squeeze %58 : memref<1x128xf32, #tpu.memory_space<any>> -> memref<128xf32, #tpu.memory_space<any>>
    %c0_i32_27 = arith.constant 0 : i32
    %60 = tpu.memref_slice %arg4[%c6_i32_24, %c0_i32_27] : memref<8x128xf32, #tpu.memory_space<vmem>> -> memref<1x128xf32, #tpu.memory_space<vmem>>
    %61 = tpu.memref_squeeze %60 : memref<1x128xf32, #tpu.memory_space<vmem>> -> memref<128xf32, #tpu.memory_space<vmem>>
    %62 = tpu.memref_slice %arg5[%c6_i32_25] : memref<8x!tpu.dma_semaphore, #tpu.memory_space<semaphore_mem>> -> memref<1x!tpu.dma_semaphore, #tpu.memory_space<semaphore_mem>>
    %63 = tpu.memref_squeeze %62 : memref<1x!tpu.dma_semaphore, #tpu.memory_space<semaphore_mem>> -> memref<!tpu.dma_semaphore, #tpu.memory_space<semaphore_mem>>
    tpu.enqueue_dma source(%59 : memref<128xf32, #tpu.memory_space<any>>) target(%61 : memref<128xf32, #tpu.memory_space<vmem>>) target_semaphore(%63 : memref<!tpu.dma_semaphore, #tpu.memory_space<semaphore_mem>>)
    %c7_i32 = arith.constant 7 : i32
    %64 = arith.addi %0, %c7_i32 : i32
    %65 = arith.index_cast %64 : i32 to index
    %66 = memref.load %arg1[%65] : memref<16xi32, #tpu.memory_space<smem>>
    %c7_i32_28 = arith.constant 7 : i32
    %c7_i32_29 = arith.constant 7 : i32
    %c0_i32_30 = arith.constant 0 : i32
    %67 = tpu.memref_slice %arg2[%66, %c0_i32_30] : memref<256x128xf32, #tpu.memory_space<any>> -> memref<1x128xf32, #tpu.memory_space<any>>
    %68 = tpu.memref_squeeze %67 : memref<1x128xf32, #tpu.memory_space<any>> -> memref<128xf32, #tpu.memory_space<any>>
    %c0_i32_31 = arith.constant 0 : i32
    %69 = tpu.memref_slice %arg4[%c7_i32_28, %c0_i32_31] : memref<8x128xf32, #tpu.memory_space<vmem>> -> memref<1x128xf32, #tpu.memory_space<vmem>>
    %70 = tpu.memref_squeeze %69 : memref<1x128xf32, #tpu.memory_space<vmem>> -> memref<128xf32, #tpu.memory_space<vmem>>
    %71 = tpu.memref_slice %arg5[%c7_i32_29] : memref<8x!tpu.dma_semaphore, #tpu.memory_space<semaphore_mem>> -> memref<1x!tpu.dma_semaphore, #tpu.memory_space<semaphore_mem>>
    %72 = tpu.memref_squeeze %71 : memref<1x!tpu.dma_semaphore, #tpu.memory_space<semaphore_mem>> -> memref<!tpu.dma_semaphore, #tpu.memory_space<semaphore_mem>>
    tpu.enqueue_dma source(%68 : memref<128xf32, #tpu.memory_space<any>>) target(%70 : memref<128xf32, #tpu.memory_space<vmem>>) target_semaphore(%72 : memref<!tpu.dma_semaphore, #tpu.memory_space<semaphore_mem>>)
    %c0_i32_32 = arith.constant 0 : i32
    %c0_i32_33 = arith.constant 0 : i32
    %c0_i32_34 = arith.constant 0 : i32
    %73 = tpu.memref_slice %arg2[%3, %c0_i32_34] : memref<256x128xf32, #tpu.memory_space<any>> -> memref<1x128xf32, #tpu.memory_space<any>>
    %74 = tpu.memref_squeeze %73 : memref<1x128xf32, #tpu.memory_space<any>> -> memref<128xf32, #tpu.memory_space<any>>
    %c0_i32_35 = arith.constant 0 : i32
    %75 = tpu.memref_slice %arg4[%c0_i32_32, %c0_i32_35] : memref<8x128xf32, #tpu.memory_space<vmem>> -> memref<1x128xf32, #tpu.memory_space<vmem>>
    %76 = tpu.memref_squeeze %75 : memref<1x128xf32, #tpu.memory_space<vmem>> -> memref<128xf32, #tpu.memory_space<vmem>>
    %77 = tpu.memref_slice %arg5[%c0_i32_33] : memref<8x!tpu.dma_semaphore, #tpu.memory_space<semaphore_mem>> -> memref<1x!tpu.dma_semaphore, #tpu.memory_space<semaphore_mem>>
    %78 = tpu.memref_squeeze %77 : memref<1x!tpu.dma_semaphore, #tpu.memory_space<semaphore_mem>> -> memref<!tpu.dma_semaphore, #tpu.memory_space<semaphore_mem>>
    tpu.wait_dma2 semaphore(%78 : memref<!tpu.dma_semaphore, #tpu.memory_space<semaphore_mem>>) src(%74 : memref<128xf32, #tpu.memory_space<any>>) dst(%76 : memref<128xf32, #tpu.memory_space<vmem>>)
    %c1_i32_36 = arith.constant 1 : i32
    %c1_i32_37 = arith.constant 1 : i32
    %c0_i32_38 = arith.constant 0 : i32
    %79 = tpu.memref_slice %arg2[%12, %c0_i32_38] : memref<256x128xf32, #tpu.memory_space<any>> -> memref<1x128xf32, #tpu.memory_space<any>>
    %80 = tpu.memref_squeeze %79 : memref<1x128xf32, #tpu.memory_space<any>> -> memref<128xf32, #tpu.memory_space<any>>
    %c0_i32_39 = arith.constant 0 : i32
    %81 = tpu.memref_slice %arg4[%c1_i32_36, %c0_i32_39] : memref<8x128xf32, #tpu.memory_space<vmem>> -> memref<1x128xf32, #tpu.memory_space<vmem>>
    %82 = tpu.memref_squeeze %81 : memref<1x128xf32, #tpu.memory_space<vmem>> -> memref<128xf32, #tpu.memory_space<vmem>>
    %83 = tpu.memref_slice %arg5[%c1_i32_37] : memref<8x!tpu.dma_semaphore, #tpu.memory_space<semaphore_mem>> -> memref<1x!tpu.dma_semaphore, #tpu.memory_space<semaphore_mem>>
    %84 = tpu.memref_squeeze %83 : memref<1x!tpu.dma_semaphore, #tpu.memory_space<semaphore_mem>> -> memref<!tpu.dma_semaphore, #tpu.memory_space<semaphore_mem>>
    tpu.wait_dma2 semaphore(%84 : memref<!tpu.dma_semaphore, #tpu.memory_space<semaphore_mem>>) src(%80 : memref<128xf32, #tpu.memory_space<any>>) dst(%82 : memref<128xf32, #tpu.memory_space<vmem>>)
    %c2_i32_40 = arith.constant 2 : i32
    %c2_i32_41 = arith.constant 2 : i32
    %c0_i32_42 = arith.constant 0 : i32
    %85 = tpu.memref_slice %arg2[%21, %c0_i32_42] : memref<256x128xf32, #tpu.memory_space<any>> -> memref<1x128xf32, #tpu.memory_space<any>>
    %86 = tpu.memref_squeeze %85 : memref<1x128xf32, #tpu.memory_space<any>> -> memref<128xf32, #tpu.memory_space<any>>
    %c0_i32_43 = arith.constant 0 : i32
    %87 = tpu.memref_slice %arg4[%c2_i32_40, %c0_i32_43] : memref<8x128xf32, #tpu.memory_space<vmem>> -> memref<1x128xf32, #tpu.memory_space<vmem>>
    %88 = tpu.memref_squeeze %87 : memref<1x128xf32, #tpu.memory_space<vmem>> -> memref<128xf32, #tpu.memory_space<vmem>>
    %89 = tpu.memref_slice %arg5[%c2_i32_41] : memref<8x!tpu.dma_semaphore, #tpu.memory_space<semaphore_mem>> -> memref<1x!tpu.dma_semaphore, #tpu.memory_space<semaphore_mem>>
    %90 = tpu.memref_squeeze %89 : memref<1x!tpu.dma_semaphore, #tpu.memory_space<semaphore_mem>> -> memref<!tpu.dma_semaphore, #tpu.memory_space<semaphore_mem>>
    tpu.wait_dma2 semaphore(%90 : memref<!tpu.dma_semaphore, #tpu.memory_space<semaphore_mem>>) src(%86 : memref<128xf32, #tpu.memory_space<any>>) dst(%88 : memref<128xf32, #tpu.memory_space<vmem>>)
    %c3_i32_44 = arith.constant 3 : i32
    %c3_i32_45 = arith.constant 3 : i32
    %c0_i32_46 = arith.constant 0 : i32
    %91 = tpu.memref_slice %arg2[%30, %c0_i32_46] : memref<256x128xf32, #tpu.memory_space<any>> -> memref<1x128xf32, #tpu.memory_space<any>>
    %92 = tpu.memref_squeeze %91 : memref<1x128xf32, #tpu.memory_space<any>> -> memref<128xf32, #tpu.memory_space<any>>
    %c0_i32_47 = arith.constant 0 : i32
    %93 = tpu.memref_slice %arg4[%c3_i32_44, %c0_i32_47] : memref<8x128xf32, #tpu.memory_space<vmem>> -> memref<1x128xf32, #tpu.memory_space<vmem>>
    %94 = tpu.memref_squeeze %93 : memref<1x128xf32, #tpu.memory_space<vmem>> -> memref<128xf32, #tpu.memory_space<vmem>>
    %95 = tpu.memref_slice %arg5[%c3_i32_45] : memref<8x!tpu.dma_semaphore, #tpu.memory_space<semaphore_mem>> -> memref<1x!tpu.dma_semaphore, #tpu.memory_space<semaphore_mem>>
    %96 = tpu.memref_squeeze %95 : memref<1x!tpu.dma_semaphore, #tpu.memory_space<semaphore_mem>> -> memref<!tpu.dma_semaphore, #tpu.memory_space<semaphore_mem>>
    tpu.wait_dma2 semaphore(%96 : memref<!tpu.dma_semaphore, #tpu.memory_space<semaphore_mem>>) src(%92 : memref<128xf32, #tpu.memory_space<any>>) dst(%94 : memref<128xf32, #tpu.memory_space<vmem>>)
    %c4_i32_48 = arith.constant 4 : i32
    %c4_i32_49 = arith.constant 4 : i32
    %c0_i32_50 = arith.constant 0 : i32
    %97 = tpu.memref_slice %arg2[%39, %c0_i32_50] : memref<256x128xf32, #tpu.memory_space<any>> -> memref<1x128xf32, #tpu.memory_space<any>>
    %98 = tpu.memref_squeeze %97 : memref<1x128xf32, #tpu.memory_space<any>> -> memref<128xf32, #tpu.memory_space<any>>
    %c0_i32_51 = arith.constant 0 : i32
    %99 = tpu.memref_slice %arg4[%c4_i32_48, %c0_i32_51] : memref<8x128xf32, #tpu.memory_space<vmem>> -> memref<1x128xf32, #tpu.memory_space<vmem>>
    %100 = tpu.memref_squeeze %99 : memref<1x128xf32, #tpu.memory_space<vmem>> -> memref<128xf32, #tpu.memory_space<vmem>>
    %101 = tpu.memref_slice %arg5[%c4_i32_49] : memref<8x!tpu.dma_semaphore, #tpu.memory_space<semaphore_mem>> -> memref<1x!tpu.dma_semaphore, #tpu.memory_space<semaphore_mem>>
    %102 = tpu.memref_squeeze %101 : memref<1x!tpu.dma_semaphore, #tpu.memory_space<semaphore_mem>> -> memref<!tpu.dma_semaphore, #tpu.memory_space<semaphore_mem>>
    tpu.wait_dma2 semaphore(%102 : memref<!tpu.dma_semaphore, #tpu.memory_space<semaphore_mem>>) src(%98 : memref<128xf32, #tpu.memory_space<any>>) dst(%100 : memref<128xf32, #tpu.memory_space<vmem>>)
    %c5_i32_52 = arith.constant 5 : i32
    %c5_i32_53 = arith.constant 5 : i32
    %c0_i32_54 = arith.constant 0 : i32
    %103 = tpu.memref_slice %arg2[%48, %c0_i32_54] : memref<256x128xf32, #tpu.memory_space<any>> -> memref<1x128xf32, #tpu.memory_space<any>>
    %104 = tpu.memref_squeeze %103 : memref<1x128xf32, #tpu.memory_space<any>> -> memref<128xf32, #tpu.memory_space<any>>
    %c0_i32_55 = arith.constant 0 : i32
    %105 = tpu.memref_slice %arg4[%c5_i32_52, %c0_i32_55] : memref<8x128xf32, #tpu.memory_space<vmem>> -> memref<1x128xf32, #tpu.memory_space<vmem>>
    %106 = tpu.memref_squeeze %105 : memref<1x128xf32, #tpu.memory_space<vmem>> -> memref<128xf32, #tpu.memory_space<vmem>>
    %107 = tpu.memref_slice %arg5[%c5_i32_53] : memref<8x!tpu.dma_semaphore, #tpu.memory_space<semaphore_mem>> -> memref<1x!tpu.dma_semaphore, #tpu.memory_space<semaphore_mem>>
    %108 = tpu.memref_squeeze %107 : memref<1x!tpu.dma_semaphore, #tpu.memory_space<semaphore_mem>> -> memref<!tpu.dma_semaphore, #tpu.memory_space<semaphore_mem>>
    tpu.wait_dma2 semaphore(%108 : memref<!tpu.dma_semaphore, #tpu.memory_space<semaphore_mem>>) src(%104 : memref<128xf32, #tpu.memory_space<any>>) dst(%106 : memref<128xf32, #tpu.memory_space<vmem>>)
    %c6_i32_56 = arith.constant 6 : i32
    %c6_i32_57 = arith.constant 6 : i32
    %c0_i32_58 = arith.constant 0 : i32
    %109 = tpu.memref_slice %arg2[%57, %c0_i32_58] : memref<256x128xf32, #tpu.memory_space<any>> -> memref<1x128xf32, #tpu.memory_space<any>>
    %110 = tpu.memref_squeeze %109 : memref<1x128xf32, #tpu.memory_space<any>> -> memref<128xf32, #tpu.memory_space<any>>
    %c0_i32_59 = arith.constant 0 : i32
    %111 = tpu.memref_slice %arg4[%c6_i32_56, %c0_i32_59] : memref<8x128xf32, #tpu.memory_space<vmem>> -> memref<1x128xf32, #tpu.memory_space<vmem>>
    %112 = tpu.memref_squeeze %111 : memref<1x128xf32, #tpu.memory_space<vmem>> -> memref<128xf32, #tpu.memory_space<vmem>>
    %113 = tpu.memref_slice %arg5[%c6_i32_57] : memref<8x!tpu.dma_semaphore, #tpu.memory_space<semaphore_mem>> -> memref<1x!tpu.dma_semaphore, #tpu.memory_space<semaphore_mem>>
    %114 = tpu.memref_squeeze %113 : memref<1x!tpu.dma_semaphore, #tpu.memory_space<semaphore_mem>> -> memref<!tpu.dma_semaphore, #tpu.memory_space<semaphore_mem>>
    tpu.wait_dma2 semaphore(%114 : memref<!tpu.dma_semaphore, #tpu.memory_space<semaphore_mem>>) src(%110 : memref<128xf32, #tpu.memory_space<any>>) dst(%112 : memref<128xf32, #tpu.memory_space<vmem>>)
    %c7_i32_60 = arith.constant 7 : i32
    %c7_i32_61 = arith.constant 7 : i32
    %c0_i32_62 = arith.constant 0 : i32
    %115 = tpu.memref_slice %arg2[%66, %c0_i32_62] : memref<256x128xf32, #tpu.memory_space<any>> -> memref<1x128xf32, #tpu.memory_space<any>>
    %116 = tpu.memref_squeeze %115 : memref<1x128xf32, #tpu.memory_space<any>> -> memref<128xf32, #tpu.memory_space<any>>
    %c0_i32_63 = arith.constant 0 : i32
    %117 = tpu.memref_slice %arg4[%c7_i32_60, %c0_i32_63] : memref<8x128xf32, #tpu.memory_space<vmem>> -> memref<1x128xf32, #tpu.memory_space<vmem>>
    %118 = tpu.memref_squeeze %117 : memref<1x128xf32, #tpu.memory_space<vmem>> -> memref<128xf32, #tpu.memory_space<vmem>>
    %119 = tpu.memref_slice %arg5[%c7_i32_61] : memref<8x!tpu.dma_semaphore, #tpu.memory_space<semaphore_mem>> -> memref<1x!tpu.dma_semaphore, #tpu.memory_space<semaphore_mem>>
    %120 = tpu.memref_squeeze %119 : memref<1x!tpu.dma_semaphore, #tpu.memory_space<semaphore_mem>> -> memref<!tpu.dma_semaphore, #tpu.memory_space<semaphore_mem>>
    tpu.wait_dma2 semaphore(%120 : memref<!tpu.dma_semaphore, #tpu.memory_space<semaphore_mem>>) src(%116 : memref<128xf32, #tpu.memory_space<any>>) dst(%118 : memref<128xf32, #tpu.memory_space<vmem>>)
    %c0 = arith.constant 0 : index
    %c0_64 = arith.constant 0 : index
    %121 = vector.load %arg4[%c0, %c0_64] : memref<8x128xf32, #tpu.memory_space<vmem>>, vector<8x128xf32>
    %cst = arith.constant 11.3137083 : f32
    %122 = vector.broadcast %cst : f32 to vector<8x128xf32>
    %123 = arith.mulf %121, %122 : vector<8x128xf32>
    %c0_65 = arith.constant 0 : index
    %c0_66 = arith.constant 0 : index
    %124 = vector.load %arg3[%c0_65, %c0_66] : memref<8x128xf32, #tpu.memory_space<vmem>>, vector<8x128xf32>
    tpu.vector_store %arg3[%c0_65, %c0_66], %123 {strides = array<i32>} : memref<8x128xf32, #tpu.memory_space<vmem>>, vector<8x128xf32>,
    return
  }
  func.func @transform_1(%arg0: i32, %arg1: memref<16xi32, #tpu.memory_space<smem>>) -> (i32, i32) {
    %c0_i32 = arith.constant 0 : i32
    %c0_i32_0 = arith.constant 0 : i32
    return %arg0, %c0_i32 : i32, i32
  }
}

</mosaic_0001>

<bundles_post_ra>
// kernel: tpu_custom_call.1
= control target key start
LH: loop header
LB: loop body
LE: loop exit
PB: predicated region body
PF: predicated region fallthrough
CT: control target
= control target key end

     0   :  { %s654_s9 = smov [#allocation5]   ;;  %s881_s0 = inlined_call_operand.hbm [shape: s32[16], index: 0, kind: input, shape index: {}]   ;;  %s882_s1 = inlined_call_operand.hbm [shape: f32[256,128], index: 1, kind: input, shape index: {}]   ;;  %s883_s2 = inlined_call_operand.hbm [shape: f32[16,128], index: 2, kind: output, shape index: {}]  }
   0x1   :  { %8 = dma.hbm_to_smem %s881_s0, 16, %s654_s9, [#allocation4] }
   0x2   :  { %620 = dma.done.wait [#allocation4], 16 }
   0x3   :  { %621 = vsyncadd [#allocation4], 4294967280 }
   0x4   :  { %10 = sfence }
   0x5   :  { %11 = vsyncpa [#allocation7], 0 }
   0x6   :  { %13 = vsyncpa [#allocation7 + $0x1], 0  ;;  %s682_s12 = smov 0   ;;  %s684_s13 = smov 0  }
   0x7   :  { %s686_s14 = smov 0  }
   0x8 LB: > { %s333_s0 = sadd.s32 4294967295, %s652_s14   ;;  %s699_s15 = sadd.s32 1, %s652_s14   ;;  %s652_s14 = sphi %s686_s14, %s888_s14   ;;  %s648_s13 = sphi %s684_s13, %s887_s13   ;;  %s644_s12 = sphi %s682_s12, %s886_s12  }
   0x9   : > { %s22_s16 = ssub.s32 %s652_s14, %s699_s15  ;;  %s25_s17 = sadd.s32 1, %s648_s13 }
   0xa   : > { %p23_p0 = scmp.eq.s32.totalorder %s22_s16, 0  ;;  %p334_p1 = scmp.ne.s32.totalorder %s22_s16, 0 }
   0xb   : > { %p29_p2 = scmp.eq.s32.totalorder %s652_s14, 1  ;;  %p34_p3 = scmp.ne.s32.totalorder %s648_s13, %s644_s12 }
   0xc   : > { %s708_s18 = scalar_select %p23_p0, %s648_s13, %s25_s17  }
   0xd   : > { %p710_p4 = por %p334_p1, %p29_p2  ;;  %p35_p5 = scmp.eq.s32.totalorder %s333_s0, 1 }
   0xe   : > { %p335_p7 = scmp.ge.s32.totalorder %s652_s14, 2 }
   0xf   : > { %p714_p6 = por %p35_p5, %p34_p3  ;;  %s49_s21 = sand.u32 (!%p335_p7), 1, %s648_s13  }
  0x10   : > { %44 = sbr.rel (%p335_p7) target bundleno = 220 (0xdc), region = 12  ;;  %s721_s22 = sshll.u32 (!%p335_p7), %s652_s14, 3 }
  0x11   : > { %s725_s23 = sshll.u32 (!%p335_p7), %s49_s21, 3  ;;  %s53_s24 = sld [smem:[#allocation5 + %s721_s22]] (!%p335_p7) }
  0x12   : > { %s655_s25 = smov (!%p335_p7), [#allocation2]   ;;  %s67_s27 = sadd.s32 (!%p335_p7), 1, %s721_s22 }
  0x13   : > { %s63_s26 = sshll.u32 (!%p335_p7), %s655_s25, 4  ;;  %s731_s28 = sld [smem:[#allocation5 + %s67_s27]] (!%p335_p7)  ;;  %s729_s26 = int_to_ptr.vmem [resolvable:$true] %s63_s26 }
  0x14   : > { %s84_s29 = sadd.s32 (!%p335_p7), 2, %s721_s22  ;;  %s656_s30 = smov (!%p335_p7), [#allocation2 + $0x1]  }
  0x15   : > { %s80_s3 = sshll.u32 %s656_s30, 4  ;;  %s734_s4 = sld [smem:[#allocation5 + %s84_s29]]  ;;  %s736_s3 = int_to_ptr.vmem [resolvable:$true] %s80_s3 }
  0x16   : > { %s744_s0 = scalar_lea.hbm %s882_s1, 4096 }
  0x17   : > { %s338_s5 = sshll.u32 %s53_s24, 4 }
  0x18   : > { %s55_s8 = scalar_lea.hbm %s882_s1, %s338_s5 }
  0x19   : > { %s406_s9 = scalar_lea.hbm %s55_s8, 16  ;;  %p409_p9 = scmp.lt.s32.totalorder %s55_s8, %s882_s1 }
  0x1a   : > { %p407_p8 = scmp.ne.s32.totalorder %s55_s8, %s406_s9  ;;  %p410_p10 = scmp.lt.s32.totalorder %s744_s0, %s406_s9 }
  0x1c   : > { %p411_p11 = por %p410_p10, %p409_p9 }
  0x1e   : > { %p412_p12 = pnand %p411_p11, %p407_p8 }
  0x20   : > { %415 = shalt.err (!%p412_p12)  }
  0x21   : > { %s416_s24 = scalar_lea.vmem %s729_s26, 16  ;;  %s753_s25 = scalar_lea.vmem %s729_s26, 128 }
  0x22   : > { %p417_p13 = scmp.ne.s32.totalorder %s729_s26, %s416_s24  ;;  %p421_p0 = scmp.lt.s32.totalorder %s729_s26, %s729_s26 }
  0x23   : > { %p422_p1 = scmp.lt.s32.totalorder %s753_s25, %s416_s24 }
  0x25   : > { %p423_p2 = por %p422_p1, %p421_p0 }
  0x27   : > { %p424_p3 = pnand %p423_p2, %p417_p13 }
  0x29   : > { %427 = shalt.err (!%p424_p3)  }
  0x2a   : > { %66 = dma.hbm_to_vmem [thread:$0]  %s55_s8, 16, %s729_s26, [#allocation3] }
  0x2b   : > { %s339_s27 = sshll.u32 %s731_s28, 4  ;;  %s657_s29 = smov [#allocation2 + $0x2]  }
  0x2c   : > { %s97_s30 = sshll.u32 %s657_s29, 4  ;;  %s70_s7 = scalar_lea.hbm %s882_s1, %s339_s27  ;;  %s763_s30 = int_to_ptr.vmem [resolvable:$true] %s97_s30 }
  0x2d   : > { %s428_s9 = scalar_lea.hbm %s70_s7, 16  ;;  %p431_p7 = scmp.lt.s32.totalorder %s70_s7, %s882_s1 }
  0x2e   : > { %p429_p5 = scmp.ne.s32.totalorder %s70_s7, %s428_s9  ;;  %p432_p8 = scmp.lt.s32.totalorder %s744_s0, %s428_s9 }
  0x30   : > { %p433_p9 = por %p432_p8, %p431_p7 }
  0x32   : > { %p434_p10 = pnand %p433_p9, %p429_p5 }
  0x34   : > { %437 = shalt.err (!%p434_p10)  }
  0x35   : > { %s438_s28 = scalar_lea.vmem %s736_s3, 16  ;;  %p443_p12 = scmp.lt.s32.totalorder %s736_s3, %s729_s26 }
  0x36   : > { %p439_p11 = scmp.ne.s32.totalorder %s736_s3, %s438_s28  ;;  %p444_p13 = scmp.lt.s32.totalorder %s753_s25, %s438_s28 }
  0x38   : > { %p445_p0 = por %p444_p13, %p443_p12 }
  0x3a   : > { %p446_p1 = pnand %p445_p0, %p439_p11 }
  0x3c   : > { %449 = shalt.err (!%p446_p1)  }
  0x3d   : > { %83 = dma.hbm_to_vmem [thread:$0]  %s70_s7, 16, %s736_s3, [#allocation3 + $0x1] }
  0x3e   : > { %s340_s8 = sshll.u32 %s734_s4, 4  ;;  %s101_s16 = sadd.s32 3, %s721_s22 }
  0x3f   : > { %s87_s27 = scalar_lea.hbm %s882_s1, %s340_s8  ;;  %s102_s29 = sld [smem:[#allocation5 + %s101_s16]] }
  0x40   : > { %s450_s5 = scalar_lea.hbm %s87_s27, 16  ;;  %p453_p3 = scmp.lt.s32.totalorder %s87_s27, %s882_s1 }
  0x41   : > { %p451_p2 = scmp.ne.s32.totalorder %s87_s27, %s450_s5  ;;  %p454_p5 = scmp.lt.s32.totalorder %s744_s0, %s450_s5 }
  0x43   : > { %p455_p7 = por %p454_p5, %p453_p3 }
  0x45   : > { %p456_p8 = pnand %p455_p7, %p451_p2 }
  0x47   : > { %459 = shalt.err (!%p456_p8)  }
  0x48   : > { %s460_s3 = scalar_lea.vmem %s763_s30, 16  ;;  %p465_p10 = scmp.lt.s32.totalorder %s763_s30, %s729_s26 }
  0x49   : > { %p461_p9 = scmp.ne.s32.totalorder %s763_s30, %s460_s3  ;;  %p466_p11 = scmp.lt.s32.totalorder %s753_s25, %s460_s3 }
  0x4b   : > { %p467_p12 = por %p466_p11, %p465_p10 }
  0x4d   : > { %p468_p13 = pnand %p467_p12, %p461_p9 }
  0x4f   : > { %471 = shalt.err (!%p468_p13)  }
  0x50   : > { %100 = dma.hbm_to_vmem [thread:$0]  %s87_s27, 16, %s763_s30, [#allocation3 + $0x2] }
  0x51   : > { %s118_s4 = sadd.s32 4, %s721_s22  ;;  %s658_s7 = smov [#allocation2 + $0x3]  }
  0x52   : > { %s114_s10 = sshll.u32 %s658_s7, 4  ;;  %s119_s11 = sld [smem:[#allocation5 + %s118_s4]]  ;;  %s115_s10 = int_to_ptr.vmem [resolvable:$true] %s114_s10 }
  0x53   : > { %s659_s28 = smov [#allocation2 + $0x4]   ;;  %s135_s16 = sadd.s32 5, %s721_s22 }
  0x54   : > { %s131_s8 = sshll.u32 %s659_s28, 4  ;;  %s341_s17 = sshll.u32 %s102_s29, 4  ;;  %s792_s8 = int_to_ptr.vmem [resolvable:$true] %s131_s8 }
  0x55   : > { %s104_s6 = scalar_lea.hbm %s882_s1, %s341_s17  ;;  %s797_s9 = sld [smem:[#allocation5 + %s135_s16]] }
  0x56   : > { %s472_s3 = scalar_lea.hbm %s104_s6, 16  ;;  %p475_p1 = scmp.lt.s32.totalorder %s104_s6, %s882_s1 }
  0x57   : > { %p473_p0 = scmp.ne.s32.totalorder %s104_s6, %s472_s3  ;;  %p476_p2 = scmp.lt.s32.totalorder %s744_s0, %s472_s3 }
  0x59   : > { %p477_p3 = por %p476_p2, %p475_p1 }
  0x5b   : > { %p478_p5 = pnand %p477_p3, %p473_p0 }
  0x5d   : > { %481 = shalt.err (!%p478_p5)  }
  0x5e   : > { %s482_s4 = scalar_lea.vmem %s115_s10, 16  ;;  %p487_p8 = scmp.lt.s32.totalorder %s115_s10, %s729_s26 }
  0x5f   : > { %p483_p7 = scmp.ne.s32.totalorder %s115_s10, %s482_s4  ;;  %p488_p9 = scmp.lt.s32.totalorder %s753_s25, %s482_s4 }
  0x61   : > { %p489_p10 = por %p488_p9, %p487_p8 }
  0x63   : > { %p490_p11 = pnand %p489_p10, %p483_p7 }
  0x65   : > { %493 = shalt.err (!%p490_p11)  }
  0x66   : > { %117 = dma.hbm_to_vmem [thread:$0]  %s104_s6, 16, %s115_s10, [#allocation3 + $0x3] }
  0x67   : > { %s342_s29 = sshll.u32 %s119_s11, 4  ;;  %s660_s17 = smov [#allocation2 + $0x5]  }
  0x68   : > { %s121_s16 = scalar_lea.hbm %s882_s1, %s342_s29  ;;  %s148_s24 = sshll.u32 %s660_s17, 4  ;;  %s149_s24 = int_to_ptr.vmem [resolvable:$true] %s148_s24 }
  0x69   : > { %s494_s5 = scalar_lea.hbm %s121_s16, 16  ;;  %p497_p13 = scmp.lt.s32.totalorder %s121_s16, %s882_s1 }
  0x6a   : > { %p495_p12 = scmp.ne.s32.totalorder %s121_s16, %s494_s5  ;;  %p498_p0 = scmp.lt.s32.totalorder %s744_s0, %s494_s5 }
  0x6c   : > { %p499_p1 = por %p498_p0, %p497_p13 }
  0x6e   : > { %p500_p2 = pnand %p499_p1, %p495_p12 }
  0x70   : > { %503 = shalt.err (!%p500_p2)  }
  0x71   : > { %s504_s10 = scalar_lea.vmem %s792_s8, 16  ;;  %p509_p5 = scmp.lt.s32.totalorder %s792_s8, %s729_s26 }
  0x72   : > { %p505_p3 = scmp.ne.s32.totalorder %s792_s8, %s504_s10  ;;  %p510_p7 = scmp.lt.s32.totalorder %s753_s25, %s504_s10 }
  0x74   : > { %p511_p8 = por %p510_p7, %p509_p5 }
  0x76   : > { %p512_p9 = pnand %p511_p8, %p505_p3 }
  0x78   : > { %515 = shalt.err (!%p512_p9)  }
  0x79   : > { %134 = dma.hbm_to_vmem [thread:$0]  %s121_s16, 16, %s792_s8, [#allocation3 + $0x4] }
  0x7a   : > { %s152_s11 = sadd.s32 6, %s721_s22  ;;  %s343_s6 = sshll.u32 %s797_s9, 4 }
  0x7b   : > { %s153_s27 = sld [smem:[#allocation5 + %s152_s11]]  ;;  %s138_s7 = scalar_lea.hbm %s882_s1, %s343_s6 }
  0x7c   : > { %s516_s28 = scalar_lea.hbm %s138_s7, 16  ;;  %p519_p11 = scmp.lt.s32.totalorder %s138_s7, %s882_s1 }
  0x7d   : > { %p517_p10 = scmp.ne.s32.totalorder %s138_s7, %s516_s28  ;;  %p520_p12 = scmp.lt.s32.totalorder %s744_s0, %s516_s28 }
  0x7f   : > { %p521_p13 = por %p520_p12, %p519_p11 }
  0x81   : > { %p522_p0 = pnand %p521_p13, %p517_p10 }
  0x83   : > { %525 = shalt.err (!%p522_p0)  }
  0x84   : > { %s526_s3 = scalar_lea.vmem %s149_s24, 16  ;;  %p531_p2 = scmp.lt.s32.totalorder %s149_s24, %s729_s26 }
  0x85   : > { %p527_p1 = scmp.ne.s32.totalorder %s149_s24, %s526_s3  ;;  %p532_p3 = scmp.lt.s32.totalorder %s753_s25, %s526_s3 }
  0x87   : > { %p533_p5 = por %p532_p3, %p531_p2 }
  0x89   : > { %p534_p7 = pnand %p533_p5, %p527_p1 }
  0x8b   : > { %537 = shalt.err (!%p534_p7)  }
  0x8c   : > { %151 = dma.hbm_to_vmem [thread:$0]  %s138_s7, 16, %s149_s24, [#allocation3 + $0x5] }
  0x8d   : > { %s661_s8 = smov [#allocation2 + $0x6]   ;;  %s169_s16 = sadd.s32 7, %s721_s22 }
  0x8e   : > { %s165_s9 = sshll.u32 %s661_s8, 4  ;;  %s170_s30 = sld [smem:[#allocation5 + %s169_s16]]  ;;  %s166_s9 = int_to_ptr.vmem [resolvable:$true] %s165_s9 }
  0x8f   : > { %s344_s10 = sshll.u32 %s153_s27, 4  ;;  %s662_s11 = smov [#allocation2 + $0x7]  }
  0x90   : > { %s182_s6 = sshll.u32 %s662_s11, 4  ;;  %s155_s28 = scalar_lea.hbm %s882_s1, %s344_s10  ;;  %s183_s6 = int_to_ptr.vmem [resolvable:$true] %s182_s6 }
  0x91   : > { %s538_s17 = scalar_lea.hbm %s155_s28, 16  ;;  %p541_p9 = scmp.lt.s32.totalorder %s155_s28, %s882_s1 }
  0x92   : > { %p539_p8 = scmp.ne.s32.totalorder %s155_s28, %s538_s17  ;;  %p542_p10 = scmp.lt.s32.totalorder %s744_s0, %s538_s17 }
  0x94   : > { %p543_p11 = por %p542_p10, %p541_p9 }
  0x96   : > { %p544_p12 = pnand %p543_p11, %p539_p8 }
  0x98   : > { %547 = shalt.err (!%p544_p12)  }
  0x99   : > { %s548_s22 = scalar_lea.vmem %s166_s9, 16  ;;  %p553_p0 = scmp.lt.s32.totalorder %s166_s9, %s729_s26 }
  0x9a   : > { %p549_p13 = scmp.ne.s32.totalorder %s166_s9, %s548_s22  ;;  %p554_p1 = scmp.lt.s32.totalorder %s753_s25, %s548_s22 }
  0x9c   : > { %p555_p2 = por %p554_p1, %p553_p0 }
  0x9e   : > { %p556_p3 = pnand %p555_p2, %p549_p13 }
  0xa0   : > { %559 = shalt.err (!%p556_p3)  }
  0xa1   : > { %168 = dma.hbm_to_vmem [thread:$0]  %s155_s28, 16, %s166_s9, [#allocation3 + $0x6] }
  0xa2   : > { %s345_s24 = sshll.u32 %s170_s30, 4 }
  0xa3   : > { %s172_s8 = scalar_lea.hbm %s882_s1, %s345_s24 }
  0xa4   : > { %s560_s16 = scalar_lea.hbm %s172_s8, 16  ;;  %p563_p7 = scmp.lt.s32.totalorder %s172_s8, %s882_s1 }
  0xa5   : > { %p561_p5 = scmp.ne.s32.totalorder %s172_s8, %s560_s16  ;;  %p564_p8 = scmp.lt.s32.totalorder %s744_s0, %s560_s16 }
  0xa7   : > { %p565_p9 = por %p564_p8, %p563_p7 }
  0xa9   : > { %p566_p10 = pnand %p565_p9, %p561_p5 }
  0xab   : > { %569 = shalt.err (!%p566_p10)  }
  0xac   : > { %s570_s4 = scalar_lea.vmem %s183_s6, 16  ;;  %p575_p12 = scmp.lt.s32.totalorder %s183_s6, %s729_s26 }
  0xad   : > { %p571_p11 = scmp.ne.s32.totalorder %s183_s6, %s570_s4  ;;  %p576_p13 = scmp.lt.s32.totalorder %s753_s25, %s570_s4 }
  0xaf   : > { %p577_p0 = por %p576_p13, %p575_p12 }
  0xb1   : > { %p578_p1 = pnand %p577_p0, %p571_p11 }
  0xb3   : > { %581 = shalt.err (!%p578_p1)  }
  0xb4   : > { %185 = dma.hbm_to_vmem [thread:$0]  %s172_s8, 16, %s183_s6, [#allocation3 + $0x7] }
  0xb5   : > { %s51_s9 = scalar_lea.vmem [#allocation6], %s725_s23 }
  0xb6   : > { %622 = dma.done.wait [#allocation3], 16 }
  0xb7   : > { %623 = vsyncadd [#allocation3], 4294967280 }
  0xb8   : > { %624 = dma.done.wait [#allocation3 + $0x1], 16 }
  0xb9   : > { %625 = vsyncadd [#allocation3 + $0x1], 4294967280 }
  0xba   : > { %626 = dma.done.wait [#allocation3 + $0x2], 16 }
  0xbb   : > { %627 = vsyncadd [#allocation3 + $0x2], 4294967280 }
  0xbc   : > { %628 = dma.done.wait [#allocation3 + $0x3], 16 }
  0xbd   : > { %629 = vsyncadd [#allocation3 + $0x3], 4294967280 }
  0xbe   : > { %630 = dma.done.wait [#allocation3 + $0x4], 16 }
  0xbf   : > { %631 = vsyncadd [#allocation3 + $0x4], 4294967280 }
  0xc0   : > { %632 = dma.done.wait [#allocation3 + $0x5], 16 }
  0xc1   : > { %633 = vsyncadd [#allocation3 + $0x5], 4294967280 }
  0xc2   : > { %634 = dma.done.wait [#allocation3 + $0x6], 16 }
  0xc3   : > { %635 = vsyncadd [#allocation3 + $0x6], 4294967280 }
  0xc4   : > { %636 = dma.done.wait [#allocation3 + $0x7], 16 }
  0xc5   : > { %637 = vsyncadd [#allocation3 + $0x7], 4294967280  ;;  %s347_s23 = sshll.u32 %s652_s14, 7  ;;  %s219_s26 = sshll.u32 %s51_s9, 4  ;;  %v202_v0 = vld [vmem:[#allocation2] sm:$0xff]  ;;  %s220_s26 = int_to_ptr.vmem [resolvable:$true] %s219_s26 }
  0xc6   : > { %v203_v1 = vmul.f32 11.313708, %v202_v0  ;;  %s217_s30 = scalar_lea.hbm %s883_s2, %s347_s23  ;;  %s206_s6 = scalar_lea.sflag [#allocation7], %s49_s21 }
  0xc7   : > { %s582_s29 = scalar_lea.vmem %s220_s26, 128  ;;  %s663_s28 = smov [#allocation6]  }
  0xc8   : > { %204 = vst [vmem:[%s51_s9] sm:$0xff] %v203_v1  ;;  %p583_p2 = scmp.ne.s32.totalorder %s220_s26, %s582_s29  ;;  %s586_s17 = sshll.u32 %s663_s28, 4  ;;  %s587_s17 = int_to_ptr.vmem [resolvable:$false] %s586_s17 }
  0xc9   : > { %s588_s5 = scalar_lea.vmem %s587_s17, 256  ;;  %p589_p7 = scmp.lt.s32.totalorder %s220_s26, %s587_s17 }
  0xca   : > { %p584_p3 = pnand %p583_p2, %p710_p4  ;;  %p590_p8 = scmp.lt.s32.totalorder %s588_s5, %s582_s29 }
  0xcc   : > { %p585_p5 = pneg %p584_p3  ;;  %p591_p9 = por %p590_p8, %p589_p7 }
  0xce   : > { %p592_p10 = pnand %p591_p9, %p585_p5 }
  0xd0   : > { %595 = shalt.err (!%p592_p10)
}
  0xd1   : > { %s596_s3 = scalar_lea.hbm %s217_s30, 128  ;;  %s600_s24 = scalar_lea.hbm %s883_s2, 256 }
  0xd2   : > { %p597_p11 = scmp.ne.s32.totalorder %s217_s30, %s596_s3  ;;  %p601_p0 = scmp.lt.s32.totalorder %s217_s30, %s883_s2 }
  0xd3   : > { %p602_p1 = scmp.lt.s32.totalorder %s600_s24, %s596_s3 }
  0xd4   : > { %p598_p12 = pnand %p597_p11, %p710_p4 }
  0xd5   : > { %p603_p2 = por %p602_p1, %p601_p0 }
  0xd6   : > { %p599_p13 = pneg %p598_p12 }
  0xd8   : > { %p604_p3 = pnand %p603_p2, %p599_p13 }
  0xda   : > { %607 = shalt.err (!%p604_p3)
}
  0xdb   : > { %358 = dma.vmem_to_hbm [thread:$0]  (%p710_p4), %s220_s26, 128, %s217_s30, %s206_s6  }
  0xdc PF: > { %p364_p5 = scmp.ge.s32.totalorder %s652_s14, 1  ;;  %s231_s8 = sand.u32 1, %s644_s12  }
  0xdd   : > { %s232_s16 = scalar_lea.sflag [#allocation7], %s231_s8 }
  0xde   : > { %p361_p7 = pnand %p364_p5, %p714_p6 }
  0xe0   : > { %p362_p8 = pneg %p361_p7 }
  0xe2   : > { %639 = dma.done.wait (%p362_p8), %s232_s16, 128  }
  0xe3   : > { %641 = vsyncadd (%p362_p8), %s232_s16, 4294967168  ;;  %p16_p9 = scmp.ge.s32.totalorder %s699_s15, 3   ;;  %s886_s12 = smov %s648_s13 }
  0xe4   : > { %s887_s13 = smov %s708_s18  ;;  %s888_s14 = smov %s699_s15 }
  0xe5   :  { %18 = sbr.rel (!%p16_p9) target bundleno = 8 (0x8), region = 105 }
  0xea   :  { %237 = vsyncpa [#allocation7], 1 }
  0xeb   :  { %239 = vsyncpa [#allocation7 + $0x1], 1 }
  0xec   :  { %240 = vsyncmov [#allocation3] }
  0xef   :  { %s241_s14 = vpop.sfrf %240 }
  0xf0   :  { %p350_p4 = scmp.ne.s32.totalorder %s241_s14, 0 }
  0xf2   :  { %245 = shalt.err (%p350_p4)  }
  0xf3   :  { %247 = vsyncmov [#allocation3 + $0x1] }
  0xf6   :  { %s248_s19 = vpop.sfrf %247 }
  0xf7   :  { %p351_p6 = scmp.ne.s32.totalorder %s248_s19, 0 }
  0xf9   :  { %252 = shalt.err (%p351_p6)  }
  0xfa   :  { %254 = vsyncmov [#allocation3 + $0x2] }
  0xfd   :  { %s255_s20 = vpop.sfrf %254 }
  0xfe   :  { %p352_p10 = scmp.ne.s32.totalorder %s255_s20, 0 }
 0x100   :  { %259 = shalt.err (%p352_p10)  }
 0x101   :  { %261 = vsyncmov [#allocation3 + $0x3] }
 0x104   :  { %s262_s10 = vpop.sfrf %261 }
 0x105   :  { %p353_p11 = scmp.ne.s32.totalorder %s262_s10, 0 }
 0x107   :  { %266 = shalt.err (%p353_p11)  }
 0x108   :  { %268 = vsyncmov [#allocation3 + $0x4] }
 0x10b   :  { %s269_s15 = vpop.sfrf %268 }
 0x10c   :  { %p354_p12 = scmp.ne.s32.totalorder %s269_s15, 0 }
 0x10e   :  { %273 = shalt.err (%p354_p12)  }
 0x10f   :  { %275 = vsyncmov [#allocation3 + $0x5] }
 0x112   :  { %s276_s1 = vpop.sfrf %275 }
 0x113   :  { %p355_p13 = scmp.ne.s32.totalorder %s276_s1, 0 }
 0x115   :  { %280 = shalt.err (%p355_p13)  }
 0x116   :  { %282 = vsyncmov [#allocation3 + $0x6] }
 0x119   :  { %s283_s2 = vpop.sfrf %282 }
 0x11a   :  { %p356_p0 = scmp.ne.s32.totalorder %s283_s2, 0 }
 0x11c   :  { %287 = shalt.err (%p356_p0)  }
 0x11d   :  { %289 = vsyncmov [#allocation3 + $0x7] }
 0x120   :  { %s290_s12 = vpop.sfrf %289 }
 0x121   :  { %p357_p1 = scmp.ne.s32.totalorder %s290_s12, 0 }
 0x123   :  { %294 = shalt.err (%p357_p1)  }

</bundles_post_ra>
